<compile_context>
chip_gen: v7x
topology: tpu7x:2x2x1
jax: 0.10.0
libtpu: 0.0.40
codegen_flags: <defaults>
</compile_context>

<pallas_src>
import functools

import jax
import jax.numpy as jnp
from jax.experimental import pallas as pl
from jax.experimental.pallas import tpu as pltpu

# Deterministic stand-in for QModule.activation_absmax (class attribute not
# shown in the reference source; 1.0 is the conventional default).
ACTIVATION_ABSMAX = 1.0
# NOTE: 2147483647 is not exactly representable in float32 (rounds to 2^31);
# the clamp is therefore off-by-one at the extreme — harmless for int8-range
# activations, documented here for completeness.
INT32_MIN = -2147483648.0
INT32_MAX = 2147483647.0

LANE_W = 1024   # lane-dense last dim (multiple of 128)
TM_MAX = 512    # rows per tile -> 512*1024*4B = 2 MiB f32 per input block


def _qadd_kernel(x_ref, y_ref, o_ref, *, restricted, aware_mode,
                 quantization_mode, is_last_node, absmax, bit_shift):
    x = x_ref[...]
    y = y_ref[...]

    # Only upcast when a quant branch actually needs f32 math; the plain add
    # path runs in the native dtype (halves vreg pressure for bf16 inputs).
    need_f32 = restricted or aware_mode or quantization_mode or is_last_node
    if need_f32 and x.dtype != jnp.float32:
        x = x.astype(jnp.float32)
        y = y.astype(jnp.float32)

    if restricted:
        x = jnp.clip(x, -absmax, absmax)
        y = jnp.clip(y, -absmax, absmax)

    if aware_mode:
        # FakeQuantizeFloor.apply(t, 128 / absmax): floor-quantize then rescale.
        # TODO(synk): exact FakeQuantizeFloor source unavailable; forward is
        # implemented as floor(t * scale) * (1/scale) (STE backward not needed).
        scale = 128.0 / absmax
        inv_scale = absmax / 128.0           # compile-time constant multiply
        x = jnp.floor(x * scale) * inv_scale
        y = jnp.floor(y * scale) * inv_scale

    out = x + y

    if quantization_mode and (not is_last_node):
        out = jnp.clip(out, INT32_MIN, INT32_MAX)
        out = jnp.floor(out * (2.0 ** (-bit_shift)))  # exact for pow-2 shifts
        out = jnp.clip(out, -128.0, 127.0)

    if is_last_node:
        out = jnp.clip(out, INT32_MIN, INT32_MAX)

    o_ref[...] = out.astype(o_ref.dtype)


def qadd(x, y, *, restricted=False, aware_mode=False, quantization_mode=False,
         is_last_node=False, bit_shift=0):
    """QAdd.forward(x, y) — elementwise add with optional quant handling."""
    assert x.shape == y.shape, "QAdd expects same-shape inputs"
    assert not (aware_mode and quantization_mode), \
        "Quantization mode and QAT mode are mutual exclusive"
    orig_shape = x.shape
    total = x.size

    # Flatten to a lane-dense (rows, LANE_W) slab; zero-pad so rows is a
    # multiple of 8 (keeps every BlockSpec tile (8,128)-aligned).
    chunk = 8 * LANE_W
    padded_total = pl.cdiv(total, chunk) * chunk
    rows = padded_total // LANE_W

    xf = x.reshape(-1)
    yf = y.reshape(-1)
    if padded_total != total:
        pad = padded_total - total
        xf = jnp.pad(xf, (0, pad))
        yf = jnp.pad(yf, (0, pad))
    x2 = xf.reshape(rows, LANE_W)
    y2 = yf.reshape(rows, LANE_W)

    # Big tiles (up to 2 MiB per input block); cdiv grid handles the ragged
    # tail via Pallas partial-block masking — no whole-array fallback, so the
    # VMEM budget stays bounded on v7x (64 MiB physical).
    tm = min(TM_MAX, rows)  # rows is a multiple of 8, so tm always is too
    grid = (pl.cdiv(rows, tm),)

    kernel = functools.partial(
        _qadd_kernel,
        restricted=restricted,
        aware_mode=aware_mode,
        quantization_mode=quantization_mode,
        is_last_node=is_last_node,
        absmax=float(ACTIVATION_ABSMAX),
        bit_shift=int(bit_shift),
    )

    out2 = pl.pallas_call(
        kernel,
        out_shape=jax.ShapeDtypeStruct((rows, LANE_W), x.dtype),
        grid=grid,
        in_specs=[
            pl.BlockSpec((tm, LANE_W), lambda i: (i, 0)),
            pl.BlockSpec((tm, LANE_W), lambda i: (i, 0)),
        ],
        out_specs=pl.BlockSpec((tm, LANE_W), lambda i: (i, 0)),
        compiler_params=pltpu.CompilerParams(
            dimension_semantics=("parallel",)),  # megacore sharding on v7x
    )(x2, y2)

    outf = out2.reshape(-1)
    if padded_total != total:
        outf = outf[:total]
    return outf.reshape(orig_shape)


if __name__ == "__main__":
    key = jax.random.PRNGKey(0)
    kx, ky = jax.random.split(key)

    # Small NCHW inputs: batch=2, channels=4, spatial=16x16.
    x = jax.random.normal(kx, (2, 4, 16, 16), dtype=jnp.float32)
    y = jax.random.normal(ky, (2, 4, 16, 16), dtype=jnp.float32)

    # 1) Default float path: out = x + y
    out = qadd(x, y)
    jax.block_until_ready(out)
    ref = x + y
    assert jnp.allclose(out, ref, atol=1e-6), "float path mismatch"

    # 2) Restricted path: clamp inputs to +/- activation_absmax before adding.
    out_r = qadd(x, y, restricted=True)
    jax.block_until_ready(out_r)
    ref_r = (jnp.clip(x, -ACTIVATION_ABSMAX, ACTIVATION_ABSMAX)
             + jnp.clip(y, -ACTIVATION_ABSMAX, ACTIVATION_ABSMAX))
    assert jnp.allclose(out_r, ref_r, atol=1e-6), "restricted path mismatch"

    # 3) Quantization-mode path on integer-valued activations (bit_shift=0
    #    per collect_q_params): clamp int32, >> bit_shift (floor), clamp int8.
    xi = jnp.round(jax.random.uniform(kx, (2, 4, 16, 16),
                                      minval=-200, maxval=200)).astype(jnp.float32)
    yi = jnp.round(jax.random.uniform(ky, (2, 4, 16, 16),
                                      minval=-200, maxval=200)).astype(jnp.float32)
    out_q = qadd(xi, yi, quantization_mode=True, bit_shift=0)
    jax.block_until_ready(out_q)
    ref_q = jnp.clip(jnp.floor(jnp.clip(xi + yi, INT32_MIN, INT32_MAX) / 1.0),
                     -128.0, 127.0)
    assert jnp.allclose(out_q, ref_q), "quantization path mismatch"

    # 4) aware_mode (QAT) path: FakeQuantizeFloor on both inputs, then add.
    out_a = qadd(x, y, aware_mode=True)
    jax.block_until_ready(out_a)
    s = 128.0 / ACTIVATION_ABSMAX
    ref_a = jnp.floor(x * s) / s + jnp.floor(y * s) / s
    assert jnp.allclose(out_a, ref_a, atol=1e-6), "aware path mismatch"

    # 5) Larger, non-aligned shape exercises the padded cdiv-grid path.
    xb = jax.random.normal(kx, (3, 5, 17, 33), dtype=jnp.float32)
    yb = jax.random.normal(ky, (3, 5, 17, 33), dtype=jnp.float32)
    out_b = qadd(xb, yb)
    jax.block_until_ready(out_b)
    assert jnp.allclose(out_b, xb + yb, atol=1e-6), "padded path mismatch"

    print("KERNEL_OK")
</pallas_src>

<mosaic_0001>
module attributes {stable_mosaic.version = 11 : i64} {
  func.func @_qadd_kernel(%arg0: i32, %arg1: memref<8x1024xf32, #tpu.memory_space<vmem>>, %arg2: memref<8x1024xf32, #tpu.memory_space<vmem>>, %arg3: memref<8x1024xf32, #tpu.memory_space<vmem>>) attributes {dimension_semantics = [#tpu.dimension_semantics<parallel>], iteration_bounds = array<i64: 1>, scalar_prefetch = 0 : i64, scratch_operands = 0 : i64, tpu.core_type = #tpu.core_type<tc>, window_params = [{transform_indices = @transform_0, window_bounds = array<i64: 8, 1024>}, {transform_indices = @transform_1, window_bounds = array<i64: 8, 1024>}, {transform_indices = @transform_2, window_bounds = array<i64: 8, 1024>}]} {
    %c0 = arith.constant 0 : index
    %c0_0 = arith.constant 0 : index
    %0 = vector.load %arg1[%c0, %c0_0] : memref<8x1024xf32, #tpu.memory_space<vmem>>, vector<8x1024xf32>
    %c0_1 = arith.constant 0 : index
    %c0_2 = arith.constant 0 : index
    %1 = vector.load %arg2[%c0_1, %c0_2] : memref<8x1024xf32, #tpu.memory_space<vmem>>, vector<8x1024xf32>
    %2 = arith.addf %0, %1 : vector<8x1024xf32>
    %c0_3 = arith.constant 0 : index
    %c0_4 = arith.constant 0 : index
    %3 = vector.load %arg3[%c0_3, %c0_4] : memref<8x1024xf32, #tpu.memory_space<vmem>>, vector<8x1024xf32>
    tpu.vector_store %arg3[%c0_3, %c0_4], %2 {strides = array<i32>} : memref<8x1024xf32, #tpu.memory_space<vmem>>, vector<8x1024xf32>,
    return
  }
  func.func @transform_0(%arg0: i32) -> (i32, i32) {
    %c0_i32 = arith.constant 0 : i32
    %c0_i32_0 = arith.constant 0 : i32
    return %arg0, %c0_i32 : i32, i32
  }
  func.func @transform_1(%arg0: i32) -> (i32, i32) {
    %c0_i32 = arith.constant 0 : i32
    %c0_i32_0 = arith.constant 0 : i32
    return %arg0, %c0_i32 : i32, i32
  }
  func.func @transform_2(%arg0: i32) -> (i32, i32) {
    %c0_i32 = arith.constant 0 : i32
    %c0_i32_0 = arith.constant 0 : i32
    return %arg0, %c0_i32 : i32, i32
  }
}

</mosaic_0001>

<bundles_post_ra>
// kernel: tpu_custom_call.1
= control target key start
LH: loop header
LB: loop body
LE: loop exit
PB: predicated region body
PF: predicated region fallthrough
CT: control target
= control target key end

     0   :  { %7 = vsyncpa [#allocation3], 0  ;;  %s213_s0 = inlined_call_operand.hbm [shape: f32[8,1024], index: 0, kind: input, shape index: {}]   ;;  %s214_s1 = inlined_call_operand.hbm [shape: f32[8,1024], index: 1, kind: input, shape index: {}]   ;;  %s215_s2 = inlined_call_operand.hbm [shape: f32[8,1024], index: 2, kind: output, shape index: {}]  }
   0x1   :  { %8 = vsyncpa [#allocation6], 0 }
   0x2   :  { %9 = vsyncpa [#allocation4], 0  ;;  %s159_s9 = smov [#allocation2]   ;;  %s160_s11 = smov [#allocation5]  }
   0x3   :  { %s16_s10 = sshll.u32 %s159_s9, 4  ;;  %s26_s12 = sshll.u32 %s160_s11, 4  ;;  %s17_s10 = int_to_ptr.vmem [resolvable:$true] %s16_s10  ;;  %s27_s12 = int_to_ptr.vmem [resolvable:$true] %s26_s12 }
   0x4   :  { %s87_s15 = scalar_lea.hbm %s213_s0, 1024 }
   0x5   :  { %p88_p0 = scmp.ne.s32.totalorder %s213_s0, %s87_s15  ;;  %p91_p1 = scmp.lt.u32.totalorder %s87_s15, %s213_s0 }
   0x7   :  { %p93_p2 = pnand %p91_p1, %p88_p0 }
   0x9   :  { %96 = shalt.err (!%p93_p2)
}
   0xa   :  { %s97_s20 = scalar_lea.vmem %s17_s10, 1024  ;;  %p102_p4 = scmp.lt.s32.totalorder %s17_s10, %s17_s10 }
   0xb   :  { %p98_p3 = scmp.ne.s32.totalorder %s17_s10, %s97_s20  ;;  %p103_p5 = scmp.lt.s32.totalorder %s97_s20, %s97_s20 }
   0xd   :  { %p104_p6 = por %p103_p5, %p102_p4 }
   0xf   :  { %p105_p7 = pnand %p104_p6, %p98_p3 }
  0x11   :  { %108 = shalt.err (!%p105_p7)
}
  0x12   :  { %19 = dma.hbm_to_vmem [thread:$0]  %s213_s0, 1024, %s17_s10, [#allocation3]  }
  0x13   :  { %s109_s25 = scalar_lea.hbm %s214_s1, 1024 }
  0x14   :  { %p110_p8 = scmp.ne.s32.totalorder %s214_s1, %s109_s25  ;;  %p113_p9 = scmp.lt.u32.totalorder %s109_s25, %s214_s1 }
  0x16   :  { %p115_p10 = pnand %p113_p9, %p110_p8 }
  0x18   :  { %118 = shalt.err (!%p115_p10)
}
  0x19   :  { %s119_s30 = scalar_lea.vmem %s27_s12, 1024  ;;  %p124_p12 = scmp.lt.s32.totalorder %s27_s12, %s27_s12 }
  0x1a   :  { %p120_p11 = scmp.ne.s32.totalorder %s27_s12, %s119_s30  ;;  %p125_p13 = scmp.lt.s32.totalorder %s119_s30, %s119_s30 }
  0x1c   :  { %p126_p0 = por %p125_p13, %p124_p12 }
  0x1e   :  { %p127_p1 = pnand %p126_p0, %p120_p11 }
  0x20   :  { %130 = shalt.err (!%p127_p1)
}
  0x21   :  { %29 = dma.hbm_to_vmem [thread:$0]  %s214_s1, 1024, %s27_s12, [#allocation6]  }
  0x22   :  { %153 = dma.done.wait [#allocation3], 1024  }
  0x23   :  { %154 = vsyncadd [#allocation3], 4294966272 }
  0x24   :  { %155 = dma.done.wait [#allocation6], 1024  }
  0x25   :  { %156 = vsyncadd [#allocation6], 4294966272  ;;  %v36_v0 = vld [vmem:[#allocation2] sm:$0xff]  ;;  %v37_v2 = vld [vmem:[#allocation2 + $0x8] sm:$0xff]  ;;  %s161_s1 = smov [#allocation7]  }
  0x26   :  { %v44_v1 = vld [vmem:[#allocation5] sm:$0xff]  ;;  %v45_v4 = vld [vmem:[#allocation5 + $0x8] sm:$0xff]  ;;  %v38_v5 = vld [vmem:[#allocation2 + $0x10] sm:$0xff]  ;;  %s74_s4 = sshll.u32 %s161_s1, 4  ;;  %s75_s4 = int_to_ptr.vmem [resolvable:$true] %s74_s4 }
  0x27   :  { %v52_v3 = vadd.f32 %v44_v1, %v36_v0  ;;  %v46_v6 = vld [vmem:[#allocation5 + $0x10] sm:$0xff]  ;;  %v53_v7 = vadd.f32 %v45_v4, %v37_v2  ;;  %v39_v9 = vld [vmem:[#allocation2 + $0x18] sm:$0xff]  ;;  %v40_v11 = vld [vmem:[#allocation2 + $0x20] sm:$0xff]  ;;  %s131_s5 = scalar_lea.vmem %s75_s4, 1024  ;;  %p136_p3 = scmp.lt.s32.totalorder %s75_s4, %s75_s4 }
  0x28   :  { %v54_v8 = vadd.f32 %v46_v6, %v38_v5  ;;  %v47_v10 = vld [vmem:[#allocation5 + $0x18] sm:$0xff]  ;;  %v48_v13 = vld [vmem:[#allocation5 + $0x20] sm:$0xff]  ;;  %v41_v14 = vld [vmem:[#allocation2 + $0x28] sm:$0xff]  ;;  %p132_p2 = scmp.ne.s32.totalorder %s75_s4, %s131_s5  ;;  %p137_p4 = scmp.lt.s32.totalorder %s131_s5, %s131_s5 }
  0x29   :  { %60 = vst [vmem:[#allocation7] sm:$0xff] %v52_v3  ;;  %v55_v12 = vadd.f32 %v47_v10, %v39_v9  ;;  %v49_v15 = vld [vmem:[#allocation5 + $0x28] sm:$0xff]  ;;  %61 = vst [vmem:[#allocation7 + $0x8] sm:$0xff] %v53_v7  ;;  %v56_v16 = vadd.f32 %v48_v13, %v40_v11  ;;  %v42_v18 = vld [vmem:[#allocation2 + $0x30] sm:$0xff] }
  0x2a   :  { %62 = vst [vmem:[#allocation7 + $0x10] sm:$0xff] %v54_v8  ;;  %v57_v17 = vadd.f32 %v49_v15, %v41_v14  ;;  %v50_v19 = vld [vmem:[#allocation5 + $0x30] sm:$0xff]  ;;  %v43_v20 = vld [vmem:[#allocation2 + $0x38] sm:$0xff]  ;;  %p138_p5 = por %p137_p4, %p136_p3 }
  0x2b   :  { %63 = vst [vmem:[#allocation7 + $0x18] sm:$0xff] %v55_v12  ;;  %v58_v21 = vadd.f32 %v50_v19, %v42_v18  ;;  %v51_v22 = vld [vmem:[#allocation5 + $0x38] sm:$0xff]  ;;  %64 = vst [vmem:[#allocation7 + $0x20] sm:$0xff] %v56_v16 }
  0x2c   :  { %65 = vst [vmem:[#allocation7 + $0x28] sm:$0xff] %v57_v17  ;;  %v59_v23 = vadd.f32 %v51_v22, %v43_v20  ;;  %p139_p6 = pnand %p138_p5, %p132_p2 }
  0x2d   :  { %66 = vst [vmem:[#allocation7 + $0x30] sm:$0xff] %v58_v21 }
  0x2e   :  { %67 = vst [vmem:[#allocation7 + $0x38] sm:$0xff] %v59_v23 }
  0x2f   :  { %142 = shalt.err (!%p139_p6)
}
  0x30   :  { %s143_s8 = scalar_lea.hbm %s215_s2, 1024 }
  0x31   :  { %p144_p7 = scmp.ne.s32.totalorder %s215_s2, %s143_s8  ;;  %p147_p8 = scmp.lt.u32.totalorder %s143_s8, %s215_s2 }
  0x33   :  { %p149_p9 = pnand %p147_p8, %p144_p7 }
  0x35   :  { %152 = shalt.err (!%p149_p9)
}
  0x36   :  { %77 = dma.vmem_to_hbm [thread:$0]  %s75_s4, 1024, %s215_s2, [#allocation4]  }
  0x37   :  { %157 = dma.done.wait [#allocation4], 1024  }
  0x38   :  { %158 = vsyncadd [#allocation4], 4294966272 }
  0x39   :  { %81 = vsyncpa [#allocation3], 1 }
  0x3a   :  { %82 = vsyncpa [#allocation6], 1 }
  0x3b   :  { %83 = vsyncpa [#allocation4], 1 }

</bundles_post_ra>
